<compile_context>
chip_gen: v7x
topology: tpu7x:2x2x1
jax: 0.10.0
libtpu: 0.0.40
codegen_flags: <defaults>
</compile_context>

<pallas_src>
import math

import jax
import jax.numpy as jnp
from jax.experimental import pallas as pl
from jax.experimental.pallas import tpu as pltpu


_MAX_DMA_CHUNKS = 4            # a few big DMAs -> concurrent DMA engines
_MIN_CHUNK_BYTES = 1 << 20     # don't split below ~1 MiB per chunk


def _chunk_rows(rows, total_bytes):
    """Static (start, size) row ranges: up to 4 large contiguous chunks."""
    if rows <= 1 or total_bytes <= _MIN_CHUNK_BYTES:
        return [(0, rows)]
    n = min(_MAX_DMA_CHUNKS, rows, max(1, total_bytes // _MIN_CHUNK_BYTES))
    base, rem = divmod(rows, n)
    bounds, start = [], 0
    for c in range(n):
        size = base + (1 if c < rem else 0)
        bounds.append((start, size))
        start += size
    return bounds


def _make_dma_copy_kernel(chunk_bounds):
    """Kernel that copies x -> o directly HBM->HBM in big chunk DMAs."""

    def kernel(x_hbm, o_hbm, sems):
        # Issue all chunk DMAs first, then wait on all of them.  The copy
        # never touches VMEM or vregs, so it runs at the DMA/HBM roofline.
        copies = []
        for c, (start, size) in enumerate(chunk_bounds):
            cp = pltpu.make_async_copy(
                x_hbm.at[pl.ds(start, size)],
                o_hbm.at[pl.ds(start, size)],
                sems.at[c],
            )
            cp.start()
            copies.append(cp)
        for cp in copies:
            cp.wait()

    return kernel


def _pallas_dma_copy_2d(x2d, chunk_bounds, *, bytes_total):
    """Identity-copy a (R, C) array with direct HBM->HBM DMAs."""
    R, C = x2d.shape
    return pl.pallas_call(
        _make_dma_copy_kernel(chunk_bounds),
        out_shape=jax.ShapeDtypeStruct((R, C), x2d.dtype),
        in_specs=[pl.BlockSpec(memory_space=pl.ANY)],
        out_specs=pl.BlockSpec(memory_space=pl.ANY),
        scratch_shapes=[pltpu.SemaphoreType.DMA((len(chunk_bounds),))],
        cost_estimate=pl.CostEstimate(
            flops=0, transcendentals=0, bytes_accessed=2 * bytes_total),
    )(x2d)


class Reshape:
    """JAX/Pallas equivalent of the PyTorch Reshape module."""

    def __init__(self, shape, use_pallas=True):
        self.shape = tuple(shape)
        # Reshape is metadata-only; `use_pallas=False` is the true zero-cost
        # path.  The default keeps the Pallas data path per the exercise.
        self.use_pallas = use_pallas

    def __call__(self, x):
        if not self.use_pallas:
            return jnp.reshape(x, self.shape)

        total = int(math.prod(x.shape)) if x.shape else 1
        itemsize = jnp.dtype(x.dtype).itemsize

        if (
            x.ndim == 0
            or total == 0
            or total % 128 != 0
            or itemsize not in (1, 2, 4, 8)
        ):
            # Ragged / empty / sub-byte (e.g. int4) cases: metadata-only.
            # TODO(synk): sub-byte dtypes skip the DMA path; the reshape
            # itself is still exact.
            return jnp.reshape(x, self.shape)

        bytes_total = total * itemsize

        # Lane-aligned 2D view (cols a multiple of 128, as wide as the element
        # count allows) keeps the DMA descriptors trivially contiguous.
        base = total // 128
        width_mult = 1
        for w in (32, 16, 8, 4, 2, 1):
            if base % w == 0:
                width_mult = w
                break
        cols = 128 * width_mult
        rows = total // cols

        chunk_bounds = _chunk_rows(rows, bytes_total)
        x2d = jnp.reshape(x, (rows, cols))
        y2d = _pallas_dma_copy_2d(x2d, chunk_bounds, bytes_total=bytes_total)
        return jnp.reshape(y2d, self.shape)

    def __repr__(self):
        return f"Reshape({self.shape})"


if __name__ == "__main__":
    key = jax.random.PRNGKey(0)

    # Input consistent with a small NCHW conv-style tensor: (2, 4, 16, 16).
    x = jax.random.normal(key, (2, 4, 16, 16), dtype=jnp.float32)
    target_shape = (2, 4, 256)  # flatten spatial dims, like x.reshape(2, 4, 256)
    mod = Reshape(target_shape)

    y = jax.block_until_ready(mod(x))
    y_ref = jnp.reshape(x, target_shape)
    assert y.shape == target_shape, (y.shape, target_shape)
    assert y.dtype == x.dtype
    assert bool(jnp.all(y == y_ref))

    # Second small check: different rank / element count through the same path.
    x2 = jax.random.normal(jax.random.PRNGKey(1), (4, 8, 32, 32), dtype=jnp.float32)
    mod2 = Reshape((32, 1024))
    y2 = jax.block_until_ready(mod2(x2))
    assert y2.shape == (32, 1024)
    assert bool(jnp.all(y2 == jnp.reshape(x2, (32, 1024))))

    print("KERNEL_OK")
</pallas_src>

<mosaic_0001>
module attributes {stable_mosaic.version = 11 : i64} {
  func.func @kernel(%arg0: memref<1x2048xf32, #tpu.memory_space<any>>, %arg1: memref<1x2048xf32, #tpu.memory_space<any>>, %arg2: memref<1x!tpu.dma_semaphore, #tpu.memory_space<semaphore_mem>>) attributes {dimension_semantics = [], scalar_prefetch = 0 : i64, scratch_operands = 1 : i64, tpu.core_type = #tpu.core_type<tc>} {
    %c0_i32 = arith.constant 0 : i32
    %c0_i32_0 = arith.constant 0 : i32
    %c0_i32_1 = arith.constant 0 : i32
    %0 = tpu.memref_slice %arg0[%c0_i32_0, %c0_i32_1] : memref<1x2048xf32, #tpu.memory_space<any>> -> memref<1x2048xf32, #tpu.memory_space<any>>
    %c0_i32_2 = arith.constant 0 : i32
    %c0_i32_3 = arith.constant 0 : i32
    %1 = tpu.memref_slice %arg1[%c0_i32_2, %c0_i32_3] : memref<1x2048xf32, #tpu.memory_space<any>> -> memref<1x2048xf32, #tpu.memory_space<any>>
    %2 = tpu.memref_slice %arg2[%c0_i32] : memref<1x!tpu.dma_semaphore, #tpu.memory_space<semaphore_mem>> -> memref<1x!tpu.dma_semaphore, #tpu.memory_space<semaphore_mem>>
    %3 = tpu.memref_squeeze %2 : memref<1x!tpu.dma_semaphore, #tpu.memory_space<semaphore_mem>> -> memref<!tpu.dma_semaphore, #tpu.memory_space<semaphore_mem>>
    tpu.enqueue_dma source(%0 : memref<1x2048xf32, #tpu.memory_space<any>>) target(%1 : memref<1x2048xf32, #tpu.memory_space<any>>) target_semaphore(%3 : memref<!tpu.dma_semaphore, #tpu.memory_space<semaphore_mem>>)
    %c0_i32_4 = arith.constant 0 : i32
    %c0_i32_5 = arith.constant 0 : i32
    %c0_i32_6 = arith.constant 0 : i32
    %4 = tpu.memref_slice %arg0[%c0_i32_5, %c0_i32_6] : memref<1x2048xf32, #tpu.memory_space<any>> -> memref<1x2048xf32, #tpu.memory_space<any>>
    %c0_i32_7 = arith.constant 0 : i32
    %c0_i32_8 = arith.constant 0 : i32
    %5 = tpu.memref_slice %arg1[%c0_i32_7, %c0_i32_8] : memref<1x2048xf32, #tpu.memory_space<any>> -> memref<1x2048xf32, #tpu.memory_space<any>>
    %6 = tpu.memref_slice %arg2[%c0_i32_4] : memref<1x!tpu.dma_semaphore, #tpu.memory_space<semaphore_mem>> -> memref<1x!tpu.dma_semaphore, #tpu.memory_space<semaphore_mem>>
    %7 = tpu.memref_squeeze %6 : memref<1x!tpu.dma_semaphore, #tpu.memory_space<semaphore_mem>> -> memref<!tpu.dma_semaphore, #tpu.memory_space<semaphore_mem>>
    tpu.wait_dma2 semaphore(%7 : memref<!tpu.dma_semaphore, #tpu.memory_space<semaphore_mem>>) src(%4 : memref<1x2048xf32, #tpu.memory_space<any>>) dst(%5 : memref<1x2048xf32, #tpu.memory_space<any>>)
    return
  }
}

</mosaic_0001>

<bundles_post_ra>
// kernel: tpu_custom_call.1
= control target key start
LH: loop header
LB: loop body
LE: loop exit
PB: predicated region body
PF: predicated region fallthrough
CT: control target
= control target key end

     0   :  { %s34_s6 = smov [#allocation2]   ;;  %s35_s7 = smov [#allocation3]   ;;  %s53_s0 = inlined_call_operand.hbm [shape: f32[1,2048], index: 0, kind: input, shape index: {}]   ;;  %s54_s1 = inlined_call_operand.hbm [shape: f32[1,2048], index: 1, kind: output, shape index: {}]  }
   0x1   :  { %s36_s8 = smov 0  }
   0x2   :  { %18 = dma.general %s53_s0, 256, %s54_s1, %s34_s6, %s35_s7, [#allocation4], %s36_s8, 0  }
   0x3   :  { %32 = dma.done.wait [#allocation2], 256 }
   0x4   :  { %33 = vsyncadd [#allocation2], 4294967040 }
   0x5   :  { %22 = vsyncmov [#allocation2] }
   0x8   :  { %s23_s13 = vpop.sfrf %22 }
   0x9   :  { %p28_p0 = scmp.ne.s32.totalorder %s23_s13, 0 }
   0xb   :  { %27 = shalt.err (%p28_p0)  }

</bundles_post_ra>
